<compile_context>
chip_gen: v7x
topology: tpu7x:2x2x1
jax: 0.10.0
libtpu: 0.0.40
codegen_flags: <defaults>
</compile_context>

<pallas_src>
import jax
import jax.numpy as jnp
from jax.experimental import pallas as pl
from jax.experimental.pallas import tpu as pltpu

T_FM = 1.0     # self.T
EPS_FM = 1e-3  # self.eps


def _round_up(x, m):
    return (x + m - 1) // m * m


def _cdiv(a, b):
    return (a + b - 1) // b


def flow_matching_forward(mel_spec, w, bias, lm_loss, key_t, key_noise):
    """mel_spec: list of [n_mels, frames_i] arrays (ragged), like the PyTorch input."""
    # --- glue: pad_sequence([mel.transpose(0,1) ...], batch_first=True) ------
    mels_td = [jnp.transpose(m, (1, 0)) for m in mel_spec]                  # (T_i, D)
    t_max = max(int(m.shape[0]) for m in mels_td)
    d = int(mels_td[0].shape[1])
    x0 = jnp.stack(
        [jnp.pad(m, ((0, t_max - m.shape[0]), (0, 0))) for m in mels_td]
    )                                                                        # (B, T, D)
    b_sz = int(x0.shape[0])

    # t ~ U(eps, T)   (torch.rand equivalent)
    t = jax.random.uniform(key_t, (b_sz,), dtype=jnp.float32) * (T_FM - EPS_FM) + EPS_FM

    # --- flatten to row tiles (no lane padding of D) --------------------------
    m_valid = b_sz * t_max                       # number of real (b, t) rows
    # Keep num_tiles even (>= 2) so v7x's two TensorCores both get work; cap
    # tile_m at 1024 (bf16 inputs keep the pipelined footprint tiny).
    tile_m = min(1024, _round_up(_cdiv(m_valid, 2), 8))
    m_pad = _round_up(m_valid, 2 * tile_m)
    num_tiles = m_pad // tile_m
    needs_row_mask = (m_pad != m_valid)

    # bf16 activations: halves input DMA; x_t is quantized to bf16 before the
    # MXU anyway, so f32 x0 would buy essentially nothing (documented drift
    # vs. the f32 PyTorch reference).
    x0_flat = jnp.pad(
        x0.reshape(m_valid, d).astype(jnp.bfloat16),
        ((0, m_pad - m_valid), (0, 0)),
    )                                                                        # (M_pad, d)

    # torch.randn_like(mel_spec): noise covers every padded (B, T_max, D) entry.
    # Pre-generated in the wrapper and streamed (see COMPILE FIX note above).
    noise_flat = jax.random.normal(key_noise, (m_pad, d), dtype=jnp.bfloat16)

    # per-row t (row r belongs to sample r // t_max)
    t_rows = jnp.pad(jnp.repeat(t, t_max), (0, m_pad - m_valid)).reshape(m_pad, 1)

    # TODO(synk): the wrapped `model` (LLM + flow head fed input_ids /
    # attention_mask / speechs / wav_path / t*999 / x_indices ...) is an
    # external nn.Module with no defined architecture here; it is replaced by
    # a deterministic linear flow head (W, b) so the hot path still exercises
    # the MXU.  The `model_output == []` early-exit branch therefore never fires.
    w_b = w.astype(jnp.bfloat16)                                             # (d, d)
    b_f = bias.astype(jnp.float32).reshape(1, d)                             # (1, d)

    def _fm_kernel(t_ref,      # (tile_m, 1)   VMEM : per-row t (f32)
                   x0_ref,     # (tile_m, d)   VMEM : clean mel rows (bf16)
                   nz_ref,     # (tile_m, d)   VMEM : streamed N(0,1) noise (bf16)
                   w_ref,      # (d, d)        VMEM : surrogate flow-head weight (bf16)
                   b_ref,      # (1, d)        VMEM : surrogate flow-head bias (f32)
                   out_ref):   # (1, 1, d)     VMEM : per-tile, per-lane partial SSE
        x0_b = x0_ref[...]                          # bf16
        nz_b = nz_ref[...]                          # bf16
        t_b = t_ref[...].astype(jnp.bfloat16)       # (tile_m, 1) bf16

        # target = x0 - noise ; x_t = t*x0 + (1-t)*noise == noise + t*target
        # (bf16 elementwise chain -> bf16 VPU on v6e/v7x)
        target = x0_b - nz_b
        x_t = nz_b + t_b * target

        # Surrogate flow head on the MXU: bf16 x bf16 -> f32 accumulation.
        x_out = jnp.dot(x_t, w_ref[...], preferred_element_type=jnp.float32)
        x_out = x_out + b_ref[...]

        diff = x_out - target.astype(jnp.float32)
        sq = diff * diff
        if needs_row_mask:
            # Only the artificial row padding beyond B*T_max is excluded; a
            # single (tile_m, 1) sublane iota + vsel, only meaningful on the
            # last tile.
            i = pl.program_id(0)
            row = jax.lax.broadcasted_iota(jnp.int32, (tile_m, 1), 0)
            sq = jnp.where(row < (m_valid - i * tile_m), sq, 0.0)

        # Per-lane partial sums (sublane reduce); cross-lane sum + /(B*T*D)
        # happen in the wrapper.
        out_ref[0] = jnp.sum(sq, axis=0, keepdims=True)

    partials = pl.pallas_call(
        _fm_kernel,
        out_shape=jax.ShapeDtypeStruct((num_tiles, 1, d), jnp.float32),
        grid=(num_tiles,),
        in_specs=[
            pl.BlockSpec((tile_m, 1), lambda i: (i, 0)),    # t per row
            pl.BlockSpec((tile_m, d), lambda i: (i, 0)),    # x0 rows (bf16)
            pl.BlockSpec((tile_m, d), lambda i: (i, 0)),    # noise rows (bf16)
            pl.BlockSpec((d, d), lambda i: (0, 0)),         # W (resident)
            pl.BlockSpec((1, d), lambda i: (0, 0)),         # bias (resident)
        ],
        out_specs=pl.BlockSpec((1, 1, d), lambda i: (i, 0, 0)),
        compiler_params=pltpu.CompilerParams(
            dimension_semantics=("parallel",)),             # megacore-shardable
    )(t_rows, x0_flat, noise_flat, w_b, b_f)

    # fm_loss = mse_loss(x_out, target, reduction='none').mean([1, 2]).mean()
    #         = total_SSE / (B * T_max * D)   (all samples padded to same T_max, D)
    fm_loss = jnp.sum(partials) / jnp.float32(b_sz * t_max * d)
    return fm_loss + lm_loss * 0.01


if __name__ == "__main__":
    key = jax.random.PRNGKey(0)
    kmel0, kmel1, kw, kb, kt, kn = jax.random.split(key, 6)

    D = 32  # n_mels
    # Ragged mel spectrograms, PyTorch convention [n_mels, frames_i]
    mel_spec = [
        jax.random.normal(kmel0, (D, 16), dtype=jnp.float32),
        jax.random.normal(kmel1, (D, 12), dtype=jnp.float32),
    ]

    # Deterministic surrogate flow-head parameters (stand-in for the external model).
    w = jax.random.normal(kw, (D, D), dtype=jnp.float32) / jnp.sqrt(jnp.float32(D))
    bias = jax.random.normal(kb, (1, D), dtype=jnp.float32) * 0.02

    # Synthetic language-model loss (outputs['loss'] of the external model).
    lm_loss = jnp.float32(2.0)

    loss = flow_matching_forward(mel_spec, w, bias, lm_loss, kt, kn)
    loss = jax.block_until_ready(loss)
    assert loss.shape == () and bool(jnp.isfinite(loss))
    print("KERNEL_OK")
</pallas_src>

<mosaic_0001>
module attributes {stable_mosaic.version = 11 : i64} {
  func.func @_fm_kernel(%arg0: i32, %arg1: memref<16x1xf32, #tpu.memory_space<vmem>>, %arg2: memref<16x32xbf16, #tpu.memory_space<vmem>>, %arg3: memref<16x32xbf16, #tpu.memory_space<vmem>>, %arg4: memref<32x32xbf16, #tpu.memory_space<vmem>>, %arg5: memref<1x32xf32, #tpu.memory_space<vmem>>, %arg6: memref<1x1x32xf32, #tpu.memory_space<vmem>>) attributes {dimension_semantics = [#tpu.dimension_semantics<parallel>], iteration_bounds = array<i64: 2>, scalar_prefetch = 0 : i64, scratch_operands = 0 : i64, tpu.core_type = #tpu.core_type<tc>, window_params = [{transform_indices = @transform_0, window_bounds = array<i64: 16, 1>}, {transform_indices = @transform_1, window_bounds = array<i64: 16, 32>}, {transform_indices = @transform_2, window_bounds = array<i64: 16, 32>}, {pipeline_mode = #tpu.pipeline_mode<synchronous>, transform_indices = @transform_3, window_bounds = array<i64: 32, 32>}, {pipeline_mode = #tpu.pipeline_mode<synchronous>, transform_indices = @transform_4, window_bounds = array<i64: 1, 32>}, {transform_indices = @transform_5, window_bounds = array<i64: 1, 1, 32>}]} {
    %c0 = arith.constant 0 : index
    %c0_0 = arith.constant 0 : index
    %0 = vector.load %arg2[%c0, %c0_0] : memref<16x32xbf16, #tpu.memory_space<vmem>>, vector<16x32xbf16>
    %c0_1 = arith.constant 0 : index
    %c0_2 = arith.constant 0 : index
    %1 = vector.load %arg3[%c0_1, %c0_2] : memref<16x32xbf16, #tpu.memory_space<vmem>>, vector<16x32xbf16>
    %c0_3 = arith.constant 0 : index
    %c0_4 = arith.constant 0 : index
    %2 = vector.load %arg1[%c0_3, %c0_4] : memref<16x1xf32, #tpu.memory_space<vmem>>, vector<16x1xf32>
    %3 = arith.truncf %2 : vector<16x1xf32> to vector<16x1xbf16>
    %4 = arith.subf %0, %1 : vector<16x32xbf16>
    %5 = vector.broadcast %3 : vector<16x1xbf16> to vector<16x32xbf16>
    %6 = arith.mulf %5, %4 : vector<16x32xbf16>
    %7 = arith.addf %1, %6 : vector<16x32xbf16>
    %c0_5 = arith.constant 0 : index
    %c0_6 = arith.constant 0 : index
    %8 = vector.load %arg4[%c0_5, %c0_6] : memref<32x32xbf16, #tpu.memory_space<vmem>>, vector<32x32xbf16>
    %cst = arith.constant dense<0.000000e+00> : vector<16x32xf32>
    %9 = tpu.matmul %7, %8, %cst {dimension_numbers = #tpu.dot_dimension_numbers<[1], [0], [0], [1], [0, 0, 1, 1], [], []>} : vector<16x32xbf16>, vector<32x32xbf16>, vector<16x32xf32> -> vector<16x32xf32>
    %c0_7 = arith.constant 0 : index
    %c0_8 = arith.constant 0 : index
    %10 = vector.load %arg5[%c0_7, %c0_8] : memref<1x32xf32, #tpu.memory_space<vmem>>, vector<1x32xf32>
    %11 = vector.broadcast %10 : vector<1x32xf32> to vector<16x32xf32>
    %12 = arith.addf %9, %11 : vector<16x32xf32>
    %13 = arith.extf %4 : vector<16x32xbf16> to vector<16x32xf32>
    %14 = arith.subf %12, %13 : vector<16x32xf32>
    %15 = arith.mulf %14, %14 : vector<16x32xf32>
    %cst_9 = arith.constant dense<0.000000e+00> : vector<32xf32>
    %16 = vector.multi_reduction <add>, %15, %cst_9 [0] : vector<16x32xf32> to vector<32xf32>
    %17 = vector.shape_cast %16 : vector<32xf32> to vector<1x32xf32>
    %c0_10 = arith.constant 0 : index
    %c0_11 = arith.constant 0 : index
    %c0_12 = arith.constant 0 : index
    %18 = vector.load %arg6[%c0_10, %c0_11, %c0_12] : memref<1x1x32xf32, #tpu.memory_space<vmem>>, vector<1x1x32xf32>
    %19 = vector.shape_cast %18 : vector<1x1x32xf32> to vector<1x32xf32>
    %20 = vector.shape_cast %17 : vector<1x32xf32> to vector<1x1x32xf32>
    tpu.vector_store %arg6[%c0_10, %c0_11, %c0_12], %20 {strides = array<i32>} : memref<1x1x32xf32, #tpu.memory_space<vmem>>, vector<1x1x32xf32>,
    return
  }
  func.func @transform_0(%arg0: i32) -> (i32, i32) {
    %c0_i32 = arith.constant 0 : i32
    %c0_i32_0 = arith.constant 0 : i32
    return %arg0, %c0_i32 : i32, i32
  }
  func.func @transform_1(%arg0: i32) -> (i32, i32) {
    %c0_i32 = arith.constant 0 : i32
    %c0_i32_0 = arith.constant 0 : i32
    return %arg0, %c0_i32 : i32, i32
  }
  func.func @transform_2(%arg0: i32) -> (i32, i32) {
    %c0_i32 = arith.constant 0 : i32
    %c0_i32_0 = arith.constant 0 : i32
    return %arg0, %c0_i32 : i32, i32
  }
  func.func @transform_3(%arg0: i32) -> (i32, i32) {
    %c0_i32 = arith.constant 0 : i32
    %c0_i32_0 = arith.constant 0 : i32
    %c0_i32_1 = arith.constant 0 : i32
    return %c0_i32, %c0_i32_0 : i32, i32
  }
  func.func @transform_4(%arg0: i32) -> (i32, i32) {
    %c0_i32 = arith.constant 0 : i32
    %c0_i32_0 = arith.constant 0 : i32
    %c0_i32_1 = arith.constant 0 : i32
    return %c0_i32, %c0_i32_0 : i32, i32
  }
  func.func @transform_5(%arg0: i32) -> (i32, i32, i32) {
    %c0_i32 = arith.constant 0 : i32
    %c0_i32_0 = arith.constant 0 : i32
    %c0_i32_1 = arith.constant 0 : i32
    return %arg0, %c0_i32, %c0_i32_0 : i32, i32, i32
  }
}

</mosaic_0001>

<bundles_post_ra>
// kernel: tpu_custom_call.1
= control target key start
LH: loop header
LB: loop body
LE: loop exit
PB: predicated region body
PF: predicated region fallthrough
CT: control target
= control target key end

     0   :  { %10 = vsyncpa [#allocation3], 0  ;;  %s879_s0 = inlined_call_operand.vmem [shape: f32[32,1], index: 0, kind: input, shape index: {}]   ;;  %s880_s1 = inlined_call_operand.vmem [shape: bf16[32,32], index: 1, kind: input, shape index: {}]   ;;  %s881_s2 = inlined_call_operand.vmem [shape: bf16[32,32], index: 2, kind: input, shape index: {}]   ;;  %s882_s3 = inlined_call_operand.hbm [shape: bf16[32,32], index: 3, kind: input, shape index: {}]   ;;  %s883_s4 = inlined_call_operand.vmem [shape: f32[1,32], index: 4, kind: input, shape index: {}]   ;;  %s884_s5 = inlined_call_operand.hbm [shape: f32[2,1,32], index: 5, kind: output, shape index: {}]  }
   0x1   :  { %11 = vsyncpa [#allocation4], 0 }
   0x2   :  { %13 = vsyncpa [#allocation4 + $0x1], 0  ;;  %s733_s18 = smov 0   ;;  %s735_s19 = smov 0  }
   0x3   :  { %s737_s20 = smov 0   ;;  %s739_s21 = smov 0  }
   0x4 LB: > { %s754_s22 = sadd.s32 4294967295, %s694_s21   ;;  %s508_s23 = sadd.s32 4294967294, %s694_s21   ;;  %s694_s21 = sphi %s739_s21, %s900_s21   ;;  %s690_s20 = sphi %s737_s20, %s899_s20   ;;  %s686_s19 = sphi %s735_s19, %s898_s19   ;;  %s682_s18 = sphi %s733_s18, %s897_s18  }
   0x5   : > { %s758_s24 = sadd.s32 1, %s694_s21   ;;  %s146_s25 = sadd.s32 1, %s690_s20 }
   0x6   : > { %s143_s26 = ssub.s32 %s694_s21, %s758_s24  ;;  %p156_p0 = scmp.ne.s32.totalorder %s690_s20, %s686_s19 }
   0x7   : > { %p144_p1 = scmp.eq.s32.totalorder %s143_s26, 0  ;;  %p157_p2 = scmp.eq.s32.totalorder %s754_s22, 1 }
   0x8   : > { %p162_p3 = scmp.ne.s32.totalorder %s686_s19, %s682_s18  ;;  %p163_p4 = scmp.eq.s32.totalorder %s508_s23, 1 }
   0x9   : > { %s769_s27 = scalar_select %p144_p1, %s690_s20, %s146_s25  }
   0xa   : > { %p771_p5 = por %p157_p2, %p156_p0  ;;  %p775_p6 = por %p163_p4, %p162_p3 }
   0xb   : > { %p509_p7 = scmp.ge.s32.totalorder %s694_s21, 1  ;;  %p170_p8 = scmp.lt.s32.totalorder %s694_s21, 3 }
   0xc   : > { %s888_s28 = scalar_select %p771_p5, 1, 0 }
   0xd   : > { %s889_s29 = scalar_select %p775_p6, 1, 0 }
   0xe   : > { %p885_p9 = scmp.eq.s32.totalorder %s754_s22, 0  ;;  %p782_p10 = pnand %p509_p7, %p170_p8 }
   0xf   : > { %s696_s6 = smov [#allocation2]   ;;  %s600_s11 = scalar_lea.hbm %s882_s3, 256 }
  0x10   : > { %s890_s30 = scalar_select %p782_p10, 1, 0 }
  0x11   : > { %s182_s7 = sshll.u32 %s696_s6, 4  ;;  %p548_p11 = pneg %p782_p10  ;;  %s183_s7 = int_to_ptr.vmem [resolvable:$true] %s182_s7 }
  0x12   : > { %p601_p13 = scmp.ne.s32.totalorder %s882_s3, %s600_s11  ;;  %p607_p3 = scmp.lt.u32.totalorder %s600_s11, %s882_s3 }
  0x13   : > { %p790_p12 = pnand %p885_p9, %p548_p11 }
  0x15   : > { %p602_p0 = pneg %p790_p12 }
  0x17   : > { %p603_p1 = pnand %p602_p0, %p601_p13 }
  0x19   : > { %p604_p2 = pneg %p603_p1 }
  0x1b   : > { %p609_p4 = pnand %p607_p3, %p604_p2 }
  0x1d   : > { %612 = shalt.err (!%p609_p4)
}
  0x1e   : > { %s613_s16 = scalar_lea.vmem %s183_s7, 256  ;;  %p621_p9 = scmp.lt.s32.totalorder %s183_s7, %s183_s7 }
  0x1f   : > { %p614_p7 = scmp.ne.s32.totalorder %s183_s7, %s613_s16  ;;  %p622_p6 = scmp.lt.s32.totalorder %s613_s16, %s613_s16 }
  0x21   : > { %p616_p8 = pnand %p614_p7, %p602_p0  ;;  %p623_p5 = por %p622_p6, %p621_p9 }
  0x23   : > { %p617_p11 = pneg %p616_p8 }
  0x25   : > { %p624_p10 = pnand %p623_p5, %p617_p11 }
  0x27   : > { %627 = shalt.err (!%p624_p10)
}
  0x28   : > { %s697_s17 = smov 64   ;;  %s698_s23 = smov 4  }
  0x29   : > { %551 = dma.hbm_to_vmem [thread:$0]  (!%p790_p12), %s882_s3, 256, %s183_s7, [#allocation3], %s697_s17, %s697_s17, %s698_s23  }
  0x2a   : > { %p892_p13 = scmp.ne.s32.totalorder %s890_s30, 0 }
  0x2b   : > { %p893_p1 = scmp.eq.s32.totalorder (!%p892_p13), %s754_s22, 0 }
  0x2c   : > { %228 = sbr.rel (%p892_p13) target bundleno = 446 (0x1be), region = 40 }
  0x33   : > { %673 = dma.done.wait (%p893_p1), [#allocation3], 256   ;;  %p894_p0 = pmov %p893_p1 }
  0x34   : > { %s514_s6 = sshll.u32 %s754_s22, 1  ;;  %v699_v0 = vmov 0   ;;  %v598_v4 = vld [vmem:[#allocation2] sm:$0xff]   ;;  %v700_v5 = vmov 0.0   ;;  %v599_v6 = vld [vmem:[#allocation2 + $0x8] sm:$0xff]   ;;  %vm701_vm0 = vmmov 0  }
  0x35   : > { %675 = vsyncadd (%p894_p0), [#allocation3], 4294967040  ;;  %597 = vset.pattern.permute.xlu0 %v699_v0  ;;  %p266_p5 = scmp.lt.s32.totalorder %s514_s6, 3  ;;  %534 = vmatprep.subr.bf16.mxu0 %v700_v5  ;;  %vm342_vm1 = vcmask 261120   ;;  %v523_v21 = vld [vmem:[%s883_s4] ss:$0 sm:$0xff] }
  0x36   : > { %535 = vmatpush3.bf16.msra.mxu0 %v598_v4  ;;  %538 = vmatprep.mubr.msk.bf16.mxu0 %vm701_vm0, %v700_v5  ;;  %s263_s25 = sand.u32 1, %s686_s19   ;;  %s528_s26 = sshll.u32 %s754_s22, 4  ;;  %vm402_vm2 = vcmask 253952  }
  0x37   : > { %s902_s6 = smov (!%p266_p5, %s514_s6), 3  ;;  %536 = vmatprep.subr.bf16.mxu0 %v700_v5  ;;  %p895_p9 = scmp.ne.s32.totalorder %s888_s28, 0 }
  0x38   : > { %s515_s8 = sshll.u32 %s902_s6, 3  ;;  %s517_s30 = sshll.u32 %s902_s6, 2 }
  0x39   : > { %s269_s7 = scalar_lea.vmem %s879_s0, %s515_s8  ;;  %s275_s13 = scalar_lea.vmem %s880_s1, %s517_s30 }
  0x3a   : > { %v288_v1 = vld [vmem:[%s269_s7] sm:$0xff]  ;;  %v289_v2 = vld [vmem:[%s269_s7 + $0x8] sm:$0xff]  ;;  %537 = vmatpush3.bf16.msra.mxu0 %v599_v6  ;;  %s281_s16 = scalar_lea.vmem %s881_s2, %s517_s30  ;;  %s264_s6 = scalar_lea.vmem [#allocation5], %s263_s25 }
  0x3b   : > { %v290_v3 = vpack.c.bf16 %v289_v2, %v288_v1  ;;  %v284_v7 = vld [vmem:[%s275_s13] sm:$0xf]  ;;  %v285_v8 = vld [vmem:[%s275_s13 + $0x4] sm:$0xf]  ;;  %s417_s8 = sshll.u32 %s264_s6, 4  ;;  %s837_s7 = scalar_lea.hbm %s884_s5, %s528_s26  ;;  %s839_s8 = int_to_ptr.vmem [resolvable:$true] %s417_s8 }
  0x3c   : > { %v286_v9 = vld [vmem:[%s281_s16] sm:$0xf]  ;;  %v287_v10 = vld [vmem:[%s281_s16 + $0x4] sm:$0xf]  ;;  %s405_s30 = scalar_lea.sflag [#allocation4], %s263_s25  ;;  %s628_s11 = scalar_lea.vmem %s839_s8, 16 }
  0x3d   : > { %295 = vperm.xlu0 %597, %v290_v3   ;;  %v291_v11 = vsub.bf16 %v284_v7, %v286_v9  ;;  %v292_v12 = vsub.bf16 %v285_v8, %v287_v10  ;;  %p629_p6 = scmp.ne.s32.totalorder %s839_s8, %s628_s11  ;;  %s702_s22 = smov [#allocation5]  }
  0x3e   : > { %s632_s12 = sshll.u32 %s702_s22, 4  ;;  %s633_s12 = int_to_ptr.vmem [resolvable:$false] %s632_s12 }
  0x3f   : > { %v520_v13 = vcombine.low %v291_v11, %v292_v12  ;;  %v387_v22 = vunpack.c.l.bf16 %v291_v11  ;;  %v388_v26 = vunpack.c.l.bf16 %v292_v12  ;;  %p630_p10 = pnand %p629_p6, %p895_p9  ;;  %s634_s13 = scalar_lea.vmem %s633_s12, 32 }
  0x40   : > { %p635_p2 = scmp.lt.s32.totalorder %s839_s8, %s633_s12  ;;  %p636_p3 = scmp.lt.s32.totalorder %s634_s13, %s628_s11 }
  0x41   : > { %p631_p12 = pneg %p630_p10 }
  0x42   : > { %p637_p4 = por %p636_p3, %p635_p2 }
  0x44   : > { %p638_p7 = pnand %p637_p4, %p631_p12 }
  0xbc   : > { %v296_v14 = vpop.permute.xlu0 %295 }
  0xbd   : > { %v304_v15 = vmul.bf16 %v520_v13, %v296_v14 }
  0xbf   : > { %v521_v16 = vcombine.low %v304_v15, %v304_v15  ;;  %v522_v17 = vcombine.high %v304_v15, %v304_v15 }
  0xc1   : > { %v312_v18 = vadd.bf16 %v521_v16, %v286_v9  ;;  %v313_v19 = vadd.bf16 %v522_v17, %v287_v10 }
  0xc3   : > { %v524_v20 = vcombine.low %v312_v18, %v313_v19 }
  0xc5   : > { %539 = vmatmul.mubr.msk.bf16.vlgmr.msra.gmra.mrb[0].mxu0 %vm342_vm1, %v524_v20 }
 0x198   : > { %v380_v23 = vpop.f32.mrb[0].mxu0 }
 0x199   : > { %v381_v24 = vadd.f32 %v523_v21, %v380_v23  ;;  %v540_v25 = vpop.f32.mrb[1].mxu0 }
 0x19a   : > { %v383_v27 = vpop.f32.mrb[2].mxu0 }
 0x19b   : > { %v389_v28 = vsub.f32 %v381_v24, %v387_v22  ;;  %v384_v29 = vadd.f32 %v523_v21, %v383_v27  ;;  %v541_v30 = vpop.f32.mrb[3].mxu0 }
 0x19d   : > { %v391_v31 = vmul.f32 %v389_v28, %v389_v28  ;;  %v390_v32 = vsub.f32 %v384_v29, %v388_v26 }
 0x19f   : > { %v392_v33 = vmul.f32 %v390_v32, %v390_v32  ;;  %v393_v34 = vsel %vm342_vm1, %v391_v31, 0.0 }
 0x1a1   : > { %v394_v35 = vsel %vm342_vm1, %v392_v33, 0.0 }
 0x1a2   : > { %v395_v36 = vadd.f32 %v394_v35, %v393_v34 }
 0x1a4   : > { %v396_v37 = vrot.slane %v395_v36, 4 }
 0x1a6   : > { %v397_v38 = vadd.f32 %v396_v37, %v395_v36 }
 0x1a8   : > { %v398_v39 = vrot.slane %v397_v38, 2 }
 0x1aa   : > { %v399_v40 = vadd.f32 %v398_v39, %v397_v38 }
 0x1ac   : > { %v400_v41 = vrot.slane %v399_v40, 1 }
 0x1ae   : > { %v401_v42 = vadd.f32 %v400_v41, %v399_v40 }
 0x1b0   : > { %403 = vst.msk [vmem:[%s264_s6] sm:$0x1] %vm402_vm2, %v401_v42 }
 0x1b1   : > { %641 = shalt.err (!%p638_p7)
}
 0x1b2   : > { %s642_s14 = scalar_lea.hbm %s837_s7, 16  ;;  %s646_s17 = scalar_lea.hbm %s884_s5, 32 }
 0x1b3   : > { %p643_p8 = scmp.ne.s32.totalorder %s837_s7, %s642_s14  ;;  %p647_p1 = scmp.lt.u32.totalorder %s837_s7, %s884_s5 }
 0x1b4   : > { %p648_p0 = scmp.lt.u32.totalorder %s646_s17, %s642_s14  ;;  %p650_p6 = scmp.lt.u32.totalorder %s642_s14, %s837_s7 }
 0x1b5   : > { %p644_p11 = pnand %p643_p8, %p895_p9 }
 0x1b6   : > { %p649_p5 = por %p648_p0, %p647_p1 }
 0x1b7   : > { %p645_p13 = pneg %p644_p11 }
 0x1b8   : > { %p651_p10 = por %p650_p6, %p649_p5 }
 0x1ba   : > { %p652_p12 = pnand %p651_p10, %p645_p13 }
 0x1bc   : > { %655 = shalt.err (!%p652_p12)
}
 0x1bd   : > { %546 = dma.vmem_to_hbm [thread:$0]  (%p895_p9), %s839_s8, 16, %s837_s7, %s405_s30  }
 0x1be PF: > { %p558_p2 = scmp.ge.s32.totalorder %s694_s21, 2  ;;  %s429_s26 = sand.u32 1, %s682_s18  }
 0x1bf   : > { %p896_p3 = scmp.ne.s32.totalorder %s889_s29, 0  ;;  %s430_s6 = scalar_lea.sflag [#allocation4], %s429_s26 }
 0x1c1   : > { %p553_p4 = pnand %p558_p2, %p896_p3 }
 0x1c3   : > { %677 = dma.done.wait (!%p553_p4), %s430_s6, 16  }
 0x1c4   : > { %679 = vsyncadd (!%p553_p4), %s430_s6, 4294967280  ;;  %p16_p7 = scmp.ge.s32.totalorder %s758_s24, 4   ;;  %s897_s18 = smov %s686_s19 }
 0x1c5   : > { %s898_s19 = smov %s690_s20  ;;  %s899_s20 = smov %s769_s27 }
 0x1c6   : > { %s900_s21 = smov %s758_s24  ;;  %18 = sbr.rel (!%p16_p7) target bundleno = 4 (0x4), region = 86 }
 0x1cd   :  { %434 = vsyncpa [#allocation3], 1 }
 0x1ce   :  { %436 = vsyncpa [#allocation3 + $0x1], 1 }
 0x1cf   :  { %437 = vsyncpa [#allocation4], 1 }
 0x1d0   :  { %439 = vsyncpa [#allocation4 + $0x1], 1 }

</bundles_post_ra>
